<compile_context>
chip_gen: v7x
topology: tpu7x:2x2x1
jax: 0.10.0
libtpu: 0.0.40
codegen_flags: <defaults>
</compile_context>

<pallas_src>
import functools
import math

import jax
import jax.numpy as jnp
from jax.experimental import pallas as pl
from jax.experimental.pallas import tpu as pltpu


def _label_smoothing_kernel(x_ref, tgt_ref, out_ref, *,
                            n_rows, block_n, padding_idx,
                            smooth_val, conf_minus_smooth):
    x = x_ref[...].astype(jnp.float32)            # (block_n, V) log-probs
    tgt = tgt_ref[...]                            # (block_n, 1) int32
    bn, v = x.shape

    col = jax.lax.broadcasted_iota(jnp.int32, (bn, v), 1)

    # Per-row pieces (row reductions go to the XLU slot):
    row_sum = jnp.sum(x, axis=-1, keepdims=True)                           # (bn,1)
    x_tgt = jnp.sum(jnp.where(col == tgt, x, 0.0), axis=-1, keepdims=True)  # (bn,1)
    x_pad = x[:, padding_idx:padding_idx + 1]                              # (bn,1)

    # row_contrib = -sum_c true_dist[r,c] * x[r,c]   (for a non-pad row)
    row_contrib = -(smooth_val * (row_sum - x_pad) + conf_minus_smooth * x_tgt)

    # Mask pad-target rows and rows past the real array end (ragged last block).
    # Select on the already-reduced value, so garbage/NaN in the overhang can
    # never reach the sum.
    row_idx = (pl.program_id(0) * block_n
               + jax.lax.broadcasted_iota(jnp.int32, (bn, 1), 0))
    valid = (tgt != padding_idx) & (row_idx < n_rows)
    partial = jnp.sum(jnp.where(valid, row_contrib, 0.0))

    # Lane-dense (1, 8, 128) output block: partial at [0, 0, 0], zeros elsewhere.
    r = jax.lax.broadcasted_iota(jnp.int32, (1, 8, 128), 1)
    c = jax.lax.broadcasted_iota(jnp.int32, (1, 8, 128), 2)
    out_ref[...] = jnp.where((r == 0) & (c == 0), partial, 0.0)


def label_smoothing_loss(x, target, *, size, padding_idx, smoothing,
                         block_n=None, vmem_budget_bytes=32 * 1024 * 1024):
    """x: (N, size) float log-probs (f32 or bf16); target: (N,) int.
    Returns scalar f32 loss == nn.KLDivLoss(reduction='sum')(x, true_dist)."""
    n, v = x.shape
    assert v == size
    assert size > 2, "LabelSmoothing requires size > 2 (smoothing/(size-2))"
    confidence = 1.0 - smoothing
    smooth_val = smoothing / (size - 2)

    # sum_c td*log(td) over one non-pad row, as a trace-time constant.
    const_per_row = 0.0
    if confidence > 0.0:
        const_per_row += confidence * math.log(confidence)
    if smoothing > 0.0:
        const_per_row += smoothing * math.log(smooth_val)

    itemsize = jnp.dtype(x.dtype).itemsize
    row_align = 16 if x.dtype == jnp.bfloat16 else 8

    if block_n is None:
        # Conservative live footprint per row:
        #   2x double-buffered x tile + 2x lane-padded (->128) int32 target tile
        #   + f32 upcast + int32 iota + one select temp.
        per_row = 2 * (v * itemsize + 128 * 4) + 3 * v * 4
        rows = max(row_align,
                   (vmem_budget_bytes // per_row) // row_align * row_align)
        # Keep >= 2 tiles when possible so both v7x TensorCores get work.
        half = ((n + 1) // 2 + row_align - 1) // row_align * row_align
        rows = min(rows, max(row_align, half))
        block_n = int(min(rows, (n + row_align - 1) // row_align * row_align))
    block_n = max(8, (block_n // 8) * 8)          # (8,128) sublane constraint

    num_tiles = pl.cdiv(n, block_n)
    tgt2d = target.astype(jnp.int32).reshape(n, 1)

    kernel = functools.partial(
        _label_smoothing_kernel,
        n_rows=n, block_n=block_n, padding_idx=padding_idx,
        smooth_val=smooth_val, conf_minus_smooth=confidence - smooth_val)

    cost = pl.CostEstimate(
        flops=6 * n * v,
        transcendentals=0,
        bytes_accessed=n * v * itemsize + n * 4 + num_tiles * 8 * 128 * 4)

    partials = pl.pallas_call(
        kernel,
        out_shape=jax.ShapeDtypeStruct((num_tiles, 8, 128), jnp.float32),
        grid_spec=pltpu.PrefetchScalarGridSpec(
            num_scalar_prefetch=0,
            grid=(num_tiles,),
            in_specs=[
                pl.BlockSpec((block_n, v), lambda i: (i, 0)),   # x row tile
                pl.BlockSpec((block_n, 1), lambda i: (i, 0)),   # target tile
            ],
            out_specs=pl.BlockSpec((1, 8, 128), lambda i: (i, 0, 0)),
        ),
        compiler_params=pltpu.CompilerParams(
            dimension_semantics=("parallel",),       # independent per-tile outputs
            vmem_limit_bytes=48 * 1024 * 1024),
        cost_estimate=cost,
    )(x, tgt2d)

    # Constant term and tiny final reduce in plain XLA.
    n_ok = jnp.sum((target != padding_idx).astype(jnp.float32))
    return jnp.sum(partials) + const_per_row * n_ok


def _reference(x, target, *, size, padding_idx, smoothing):
    """Pure-JAX reference mirroring the PyTorch module exactly."""
    n, v = x.shape
    confidence = 1.0 - smoothing
    td = jnp.full((n, v), smoothing / (size - 2), jnp.float32)
    td = td.at[jnp.arange(n), target].set(confidence)
    td = td.at[:, padding_idx].set(0.0)
    td = jnp.where((target == padding_idx)[:, None], 0.0, td)
    contrib = jnp.where(td > 0, td * (jnp.log(jnp.where(td > 0, td, 1.0)) - x), 0.0)
    return jnp.sum(contrib)


if __name__ == "__main__":
    key = jax.random.PRNGKey(0)
    padding_idx = 0
    smoothing = 0.1

    ok = True

    # Case 1: shapes matching the module spec demo.
    N, V = 16, 32
    k1, k2 = jax.random.split(key)
    logits = jax.random.normal(k1, (N, V), jnp.float32)
    x = jax.nn.log_softmax(logits, axis=-1)                 # module expects log-probs
    target = jax.random.randint(k2, (N,), 0, V, jnp.int32)
    target = target.at[3].set(padding_idx)
    target = target.at[7].set(padding_idx)

    loss = label_smoothing_loss(x, target, size=V,
                                padding_idx=padding_idx, smoothing=smoothing)
    loss = jax.block_until_ready(loss)
    ref = _reference(x, target, size=V, padding_idx=padding_idx, smoothing=smoothing)
    ok &= bool(jnp.allclose(loss, ref, rtol=1e-5, atol=1e-5))

    # Case 2: ragged last row-block + non-128-multiple vocab (no padding anywhere).
    N2, V2 = 24, 160
    k3, k4 = jax.random.split(k2)
    x2 = jax.nn.log_softmax(jax.random.normal(k3, (N2, V2), jnp.float32), axis=-1)
    t2 = jax.random.randint(k4, (N2,), 0, V2, jnp.int32)
    t2 = t2.at[5].set(padding_idx)

    loss2 = label_smoothing_loss(x2, t2, size=V2, padding_idx=padding_idx,
                                 smoothing=smoothing)
    loss2 = jax.block_until_ready(loss2)
    ref2 = _reference(x2, t2, size=V2, padding_idx=padding_idx, smoothing=smoothing)
    ok &= bool(jnp.allclose(loss2, ref2, rtol=1e-5, atol=1e-5))

    assert ok, (loss, ref, loss2, ref2)
    print("KERNEL_OK")
</pallas_src>

<mosaic_0001>
module attributes {stable_mosaic.version = 11 : i64} {
  func.func @_label_smoothing_kernel(%arg0: i32, %arg1: memref<8x32xf32, #tpu.memory_space<vmem>>, %arg2: memref<8x1xi32, #tpu.memory_space<vmem>>, %arg3: memref<1x8x128xf32, #tpu.memory_space<vmem>>) attributes {dimension_semantics = [#tpu.dimension_semantics<parallel>], iteration_bounds = array<i64: 2>, scalar_prefetch = 0 : i64, scratch_operands = 0 : i64, tpu.core_type = #tpu.core_type<tc>, window_params = [{transform_indices = @transform_0, window_bounds = array<i64: 8, 32>}, {transform_indices = @transform_1, window_bounds = array<i64: 8, 1>}, {transform_indices = @transform_2, window_bounds = array<i64: 1, 8, 128>}]} {
    %c0 = arith.constant 0 : index
    %c0_0 = arith.constant 0 : index
    %0 = vector.load %arg1[%c0, %c0_0] : memref<8x32xf32, #tpu.memory_space<vmem>>, vector<8x32xf32>
    %c0_1 = arith.constant 0 : index
    %c0_2 = arith.constant 0 : index
    %1 = vector.load %arg2[%c0_1, %c0_2] : memref<8x1xi32, #tpu.memory_space<vmem>>, vector<8x1xi32>
    %2 = tpu.iota {dimensions = array<i32: 1>} : vector<8x32xi32>
    %cst = arith.constant dense<0.000000e+00> : vector<8xf32>
    %3 = vector.multi_reduction <add>, %0, %cst [1] : vector<8x32xf32> to vector<8xf32>
    %4 = vector.shape_cast %3 : vector<8xf32> to vector<8x1xf32>
    %5 = vector.broadcast %1 : vector<8x1xi32> to vector<8x32xi32>
    %6 = arith.cmpi eq, %2, %5 : vector<8x32xi32>
    %cst_3 = arith.constant 0.000000e+00 : f32
    %7 = vector.broadcast %cst_3 : f32 to vector<8x32xf32>
    %8 = arith.select %6, %0, %7 : vector<8x32xi1>, vector<8x32xf32>
    %cst_4 = arith.constant dense<0.000000e+00> : vector<8xf32>
    %9 = vector.multi_reduction <add>, %8, %cst_4 [1] : vector<8x32xf32> to vector<8xf32>
    %10 = vector.shape_cast %9 : vector<8xf32> to vector<8x1xf32>
    %11 = vector.extract_strided_slice %0 {offsets = [0, 0], sizes = [8, 1], strides = [1, 1]} : vector<8x32xf32> to vector<8x1xf32>
    %12 = arith.subf %4, %11 : vector<8x1xf32>
    %cst_5 = arith.constant 0.00333333341 : f32
    %13 = vector.broadcast %cst_5 : f32 to vector<8x1xf32>
    %14 = arith.mulf %13, %12 : vector<8x1xf32>
    %cst_6 = arith.constant 0.896666646 : f32
    %15 = vector.broadcast %cst_6 : f32 to vector<8x1xf32>
    %16 = arith.mulf %15, %10 : vector<8x1xf32>
    %17 = arith.addf %14, %16 : vector<8x1xf32>
    %cst_7 = arith.constant 0.000000e+00 : f32
    %18 = vector.broadcast %cst_7 : f32 to vector<8x1xf32>
    %19 = arith.subf %18, %17 : vector<8x1xf32>
    %c8_i32 = arith.constant 8 : i32
    %20 = arith.muli %arg0, %c8_i32 : i32
    %21 = tpu.iota {dimensions = array<i32: 0>} : vector<8x1xi32>
    %22 = vector.broadcast %20 : i32 to vector<8x1xi32>
    %23 = arith.addi %22, %21 : vector<8x1xi32>
    %c0_i32 = arith.constant 0 : i32
    %24 = vector.broadcast %c0_i32 : i32 to vector<8x1xi32>
    %25 = arith.cmpi ne, %1, %24 : vector<8x1xi32>
    %c16_i32 = arith.constant 16 : i32
    %26 = vector.broadcast %c16_i32 : i32 to vector<8x1xi32>
    %27 = arith.cmpi slt, %23, %26 : vector<8x1xi32>
    %28 = arith.andi %25, %27 : vector<8x1xi1>
    %cst_8 = arith.constant 0.000000e+00 : f32
    %29 = vector.broadcast %cst_8 : f32 to vector<8x1xf32>
    %30 = arith.select %28, %19, %29 : vector<8x1xi1>, vector<8x1xf32>
    %31 = vector.shape_cast %30 : vector<8x1xf32> to vector<1x8x1xf32>
    %cst_9 = arith.constant dense<0.000000e+00> : vector<1xf32>
    %32 = vector.multi_reduction <add>, %31, %cst_9 [1, 2] : vector<1x8x1xf32> to vector<1xf32>
    %33 = vector.shape_cast %32 : vector<1xf32> to vector<1x1x1xf32>
    %34 = vector.extract %33[0, 0, 0] : f32 from vector<1x1x1xf32>
    %35 = tpu.iota {dimensions = array<i32: 1>} : vector<1x8x128xi32>
    %36 = tpu.iota {dimensions = array<i32: 2>} : vector<1x8x128xi32>
    %c0_i32_10 = arith.constant 0 : i32
    %37 = vector.broadcast %c0_i32_10 : i32 to vector<1x8x128xi32>
    %38 = arith.cmpi eq, %35, %37 : vector<1x8x128xi32>
    %c0_i32_11 = arith.constant 0 : i32
    %39 = vector.broadcast %c0_i32_11 : i32 to vector<1x8x128xi32>
    %40 = arith.cmpi eq, %36, %39 : vector<1x8x128xi32>
    %41 = arith.andi %38, %40 : vector<1x8x128xi1>
    %cst_12 = arith.constant 0.000000e+00 : f32
    %42 = vector.broadcast %34 : f32 to vector<1x8x128xf32>
    %43 = vector.broadcast %cst_12 : f32 to vector<1x8x128xf32>
    %44 = arith.select %41, %42, %43 : vector<1x8x128xi1>, vector<1x8x128xf32>
    %c0_13 = arith.constant 0 : index
    %c0_14 = arith.constant 0 : index
    %c0_15 = arith.constant 0 : index
    %45 = vector.load %arg3[%c0_13, %c0_14, %c0_15] : memref<1x8x128xf32, #tpu.memory_space<vmem>>, vector<1x8x128xf32>
    tpu.vector_store %arg3[%c0_13, %c0_14, %c0_15], %44 {strides = array<i32>} : memref<1x8x128xf32, #tpu.memory_space<vmem>>, vector<1x8x128xf32>,
    return
  }
  func.func @transform_0(%arg0: i32) -> (i32, i32) {
    %c0_i32 = arith.constant 0 : i32
    %c0_i32_0 = arith.constant 0 : i32
    return %arg0, %c0_i32 : i32, i32
  }
  func.func @transform_1(%arg0: i32) -> (i32, i32) {
    %c0_i32 = arith.constant 0 : i32
    %c0_i32_0 = arith.constant 0 : i32
    return %arg0, %c0_i32 : i32, i32
  }
  func.func @transform_2(%arg0: i32) -> (i32, i32, i32) {
    %c0_i32 = arith.constant 0 : i32
    %c0_i32_0 = arith.constant 0 : i32
    %c0_i32_1 = arith.constant 0 : i32
    return %arg0, %c0_i32, %c0_i32_0 : i32, i32, i32
  }
}

</mosaic_0001>

<bundles_post_ra>
// kernel: tpu_custom_call.1
= control target key start
LH: loop header
LB: loop body
LE: loop exit
PB: predicated region body
PF: predicated region fallthrough
CT: control target
= control target key end

     0   :  { %7 = vsyncpa [#allocation3], 0  ;;  %s528_s0 = inlined_call_operand.vmem [shape: f32[16,32], index: 0, kind: input, shape index: {}]   ;;  %s529_s1 = inlined_call_operand.vmem [shape: s32[16,1], index: 1, kind: input, shape index: {}]   ;;  %s530_s2 = inlined_call_operand.hbm [shape: f32[2,8,128], index: 2, kind: output, shape index: {}]  }
   0x1   :  { %9 = vsyncpa [#allocation3 + $0x1], 0  ;;  %s424_s9 = smov 0   ;;  %s426_s10 = smov 0  }
   0x2   :  { %s428_s11 = smov 0   ;;  %s430_s12 = smov 0  }
   0x3 LB: > { %s445_s13 = sadd.s32 4294967295, %s405_s12   ;;  %s288_s14 = sadd.s32 4294967294, %s405_s12   ;;  %s405_s12 = sphi %s430_s12, %s536_s12   ;;  %s401_s11 = sphi %s428_s11, %s535_s11   ;;  %s397_s10 = sphi %s426_s10, %s534_s10   ;;  %s393_s9 = sphi %s424_s9, %s533_s9  }
   0x4   : > { %s449_s15 = sadd.s32 1, %s405_s12   ;;  %s74_s16 = sadd.s32 1, %s401_s11 }
   0x5   : > { %s71_s17 = ssub.s32 %s405_s12, %s449_s15  ;;  %p84_p0 = scmp.ne.s32.totalorder %s401_s11, %s397_s10 }
   0x6   : > { %p72_p1 = scmp.eq.s32.totalorder %s71_s17, 0  ;;  %p85_p2 = scmp.eq.s32.totalorder %s445_s13, 1 }
   0x7   : > { %p90_p3 = scmp.ne.s32.totalorder %s397_s10, %s393_s9  ;;  %p91_p4 = scmp.eq.s32.totalorder %s288_s14, 1 }
   0x8   : > { %s460_s18 = scalar_select %p72_p1, %s401_s11, %s74_s16  }
   0x9   : > { %p462_p5 = por %p85_p2, %p84_p0  ;;  %p466_p6 = por %p91_p4, %p90_p3 }
   0xa   : > { %p291_p7 = scmp.ge.s32.totalorder %s405_s12, 1  ;;  %p123_p8 = scmp.lt.s32.totalorder %s405_s12, 3 }
   0xc   : > { %p124_p9 = pnand %p291_p7, %p123_p8 }
   0xd   : > { %p148_p10 = scmp.lt.s32.totalorder (!%p124_p9), %s445_s13, 1  ;;  %v407_v0 = vmov (!%p124_p9), 0   ;;  %vm160_vm0 = vcmask (!%p124_p9), 261120   ;;  %v158_v4 = vlaneseq (!%p124_p9)  ;;  %s295_s29 = sshll.u32 (!%p124_p9), %s445_s13, 3  ;;  %vm186_vm5 = vcmask (!%p124_p9), 7168  }
   0xe   : > { %127 = sbr.rel (%p124_p9) target bundleno = 527 (0x20f), region = 28  ;;  %342 = vset.pattern.permute.xlu0 (!%p124_p9), %v407_v0  ;;  %v180_v11 = vstv (!%p124_p9), %s295_s29  ;;  %s145_s30 = sand.u32 (!%p124_p9), 1, %s397_s10  }
   0xf   : > { %v159_v5 = vand.u32 (!%p124_p9), 127, %v158_v4  ;;  %v179_v10 = vshrl.u32 (!%p124_p9), %v158_v4, 7  ;;  %s292_s3 = sshll.u32 (!%p124_p9), %s145_s30, 3  ;;  %s297_s4 = sshll.u32 (!%p124_p9), %s445_s13, 7 }
  0x10   : > { %s147_s5 = scalar_lea.vmem (!%p124_p9), [#allocation2], %s292_s3  ;;  %s486_s16 = scalar_lea.hbm (!%p124_p9), %s530_s2, %s297_s4 }
  0x11   : > { %v181_v13 = vadd.s32 (!%p124_p9), %v180_v11, %v179_v10  ;;  %vm197_vm6 = vcmp.eq.s32.totalorder (!%p124_p9), %v179_v10, 0  ;;  %vm198_vm7 = vcmp.eq.s32.totalorder (!%p124_p9), %v159_v5, 0  ;;  %s217_s6 = sshll.u32 (!%p124_p9), %s147_s5, 4  ;;  %s204_s17 = scalar_lea.sflag (!%p124_p9), [#allocation3], %s145_s30  ;;  %s488_s6 = int_to_ptr.vmem [resolvable:$true] %s217_s6 }
  0x12   : > { %vm199_vm8 = vmand (!%p124_p9), %vm197_vm6, %vm198_vm7 }
  0x13   : > { %vm183_vm3 = vcmp.lt.s32.totalorder (!%p124_p9), %v181_v13, 16 }
  0x15   : > { %s149_s21 = scalar_select %p148_p10, %s445_s13, 1 }
  0x16   : > { %s408_s13 = smov [#allocation2]  }
  0x17   : > { %s293_s22 = sshll.u32 %s149_s21, 3  ;;  %s343_s21 = scalar_lea.vmem %s488_s6, 128 }
  0x18   : > { %s155_s25 = scalar_lea.vmem %s529_s1, %s293_s22  ;;  %s151_s28 = scalar_lea.vmem %s528_s0, %s293_s22 }
  0x19   : > { %v157_v1 = vld [vmem:[%s155_s25] sm:$0xff]  ;;  %p344_p11 = scmp.ne.s32.totalorder %s488_s6, %s343_s21  ;;  %s347_s22 = sshll.u32 %s408_s13, 4  ;;  %s348_s22 = int_to_ptr.vmem [resolvable:$false] %s347_s22 }
  0x1a   : > { %165 = vperm.xlu0 %342, %v157_v1   ;;  %v156_v2 = vld [vmem:[%s151_s28] sm:$0xff]  ;;  %vm182_vm2 = vcmp.ne.s32.totalorder %v157_v1, 0  ;;  %s349_s23 = scalar_lea.vmem %s348_s22, 256  ;;  %p350_p0 = scmp.lt.s32.totalorder %s488_s6, %s348_s22 }
  0x1b   : > { %v161_v3 = vsel %vm160_vm0, %v156_v2, 0.0  ;;  %vm184_vm4 = vmand %vm182_vm2, %vm183_vm3  ;;  %p345_p12 = pnand %p344_p11, %p462_p5  ;;  %p351_p1 = scmp.lt.s32.totalorder %s349_s23, %s343_s21 }
  0x1d   : > { %p346_p13 = pneg %p345_p12  ;;  %p352_p2 = por %p351_p1, %p350_p0 }
  0x1f   : > { %p353_p3 = pnand %p352_p2, %p346_p13 }
  0x39   : > { %162 = vadd.xlane.f32.xlu0 %v161_v3 }
  0x99   : > { %v166_v6 = vpop.permute.xlu0 %165 }
  0x9a   : > { %vm167_vm1 = vcmp.eq.s32.totalorder %v159_v5, %v166_v6 }
  0x9b   : > { %v168_v7 = vsel %vm167_vm1, %v156_v2, 0.0 }
  0x9c   : > { %v169_v8 = vsel %vm160_vm0, %v168_v7, 0.0 }
  0x9d   : > { %170 = vadd.xlane.f32.xlu1 %v169_v8 }
  0xc6   : > { %v163_v9 = vpop.xlane.xlu0 %162 }
  0xc7   : > { %v172_v12 = vsub.f32 %v163_v9, %v156_v2 }
  0xc9   : > { %v173_v14 = vmul.f32 0.0033333334, %v172_v12 }
 0x12a   : > { %v171_v15 = vpop.xlane.xlu1 %170 }
 0x12b   : > { %v174_v16 = vmul.f32 0.89666665, %v171_v15 }
 0x12d   : > { %v175_v17 = vadd.f32 %v174_v16, %v173_v14 }
 0x12f   : > { %v176_v18 = vsub.f32 0.0, %v175_v17 }
 0x131   : > { %v185_v19 = vsel %vm184_vm4, %v176_v18, 0.0 }
 0x132   : > { %v187_v20 = vsel %vm186_vm5, %v185_v19, 0.0 }
 0x133   : > { %188 = vadd.xlane.f32.xlu1 %v187_v20 }
 0x1c0   : > { %v189_v21 = vpop.xlane.xlu1 %188 }
 0x1c1   : > { %v190_v22 = vrot.slane %v189_v21, 4 }
 0x1c3   : > { %v191_v23 = vadd.f32 %v190_v22, %v189_v21 }
 0x1c5   : > { %v192_v24 = vrot.slane %v191_v23, 2 }
 0x1c7   : > { %v193_v25 = vadd.f32 %v192_v24, %v191_v23 }
 0x1c9   : > { %v194_v26 = vrot.slane %v193_v25, 1 }
 0x1cb   : > { %v195_v27 = vadd.f32 %v194_v26, %v193_v25 }
 0x1cd   : > { %300 = vpush %v195_v27 }
 0x1fe   : > { %s301_s7 = spop %300 }
 0x1ff   : > { %v200_v28 = vstv %s301_s7 }
 0x200   : > { %v201_v29 = vsel %vm199_vm8, %v200_v28, 0.0 }
 0x201   : > { %202 = vst [vmem:[%s147_s5] sm:$0xff] %v201_v29 }
 0x202   : > { %356 = shalt.err (!%p353_p3)
}
 0x203   : > { %s357_s24 = scalar_lea.hbm %s486_s16, 128  ;;  %s361_s27 = scalar_lea.hbm %s530_s2, 256 }
 0x204   : > { %p358_p4 = scmp.ne.s32.totalorder %s486_s16, %s357_s24  ;;  %p362_p9 = scmp.lt.u32.totalorder %s486_s16, %s530_s2 }
 0x205   : > { %p363_p10 = scmp.lt.u32.totalorder %s361_s27, %s357_s24  ;;  %p365_p12 = scmp.lt.u32.totalorder %s357_s24, %s486_s16 }
 0x206   : > { %p359_p7 = pnand %p358_p4, %p462_p5 }
 0x207   : > { %p364_p11 = por %p363_p10, %p362_p9 }
 0x208   : > { %p360_p8 = pneg %p359_p7 }
 0x209   : > { %p366_p13 = por %p365_p12, %p364_p11 }
 0x20b   : > { %p367_p0 = pnand %p366_p13, %p360_p8 }
 0x20d   : > { %370 = shalt.err (!%p367_p0)
}
 0x20e   : > { %302 = dma.vmem_to_hbm [thread:$0]  (%p462_p5), %s488_s6, 128, %s486_s16, %s204_s17  }
 0x20f PF: > { %p308_p1 = scmp.ge.s32.totalorder %s405_s12, 2  ;;  %s229_s30 = sand.u32 1, %s393_s9  }
 0x210   : > { %s230_s3 = scalar_lea.sflag [#allocation3], %s229_s30 }
 0x211   : > { %p305_p2 = pnand %p308_p1, %p466_p6 }
 0x213   : > { %388 = dma.done.wait (!%p305_p2), %s230_s3, 128  }
 0x214   : > { %390 = vsyncadd (!%p305_p2), %s230_s3, 4294967168  ;;  %p12_p3 = scmp.ge.s32.totalorder %s449_s15, 4   ;;  %s533_s9 = smov %s397_s10 }
 0x215   : > { %s534_s10 = smov %s401_s11  ;;  %s535_s11 = smov %s460_s18 }
 0x216   : > { %s536_s12 = smov %s449_s15  ;;  %14 = sbr.rel (!%p12_p3) target bundleno = 3 (0x3), region = 66 }
 0x21d   :  { %235 = vsyncpa [#allocation3], 1 }
 0x21e   :  { %237 = vsyncpa [#allocation3 + $0x1], 1 }

</bundles_post_ra>
